<compile_context>
chip_gen: v7x
topology: tpu7x:2x2x1
jax: 0.10.0
libtpu: 0.0.40
codegen_flags: <defaults>
</compile_context>

<pallas_src>
import jax
import jax.numpy as jnp
from jax.experimental import pallas as pl
from jax.experimental.pallas import tpu as pltpu


def _sae_kernel(x_ref,
                w1_ref, b1_ref,
                w2_ref, b2_ref,
                w3_ref, b3_ref,
                w4_ref, b4_ref,
                out_ref):
    """Fused 4-layer encoder: relu(relu(relu(relu(x W1+b1) W2+b2) W3+b3) W4+b4).

    Weights are bf16 (MXU operands); accumulation, bias-add and ReLU are f32.
    The x tile arrives in its native dtype and is cast to bf16 on the VPU here
    (cheap, hidden under the MXU cadence) instead of via a standalone XLA op.
    """

    def enc(h_bf16, w_ref, b_ref):
        z = jnp.dot(h_bf16, w_ref[...], preferred_element_type=jnp.float32)
        z = z + b_ref[...]            # (1, D_out) f32 bias -> broadcasts over rows
        return jnp.maximum(z, 0.0)    # ReLU in f32 (VPU)

    h = enc(x_ref[...].astype(jnp.bfloat16), w1_ref, b1_ref)
    h = enc(h.astype(jnp.bfloat16), w2_ref, b2_ref)
    h = enc(h.astype(jnp.bfloat16), w3_ref, b3_ref)
    h = enc(h.astype(jnp.bfloat16), w4_ref, b4_ref)
    out_ref[...] = h.astype(out_ref.dtype)


def prepare_stacked_autoencoder_params(params):
    """One-time conversion of PyTorch-style params to kernel operands.

    params: list of 4 (W [Din, Dout], b [Dout] or [1, Dout]) float arrays.
    Returns a tuple of (W bf16 [Din, Dout], b f32 [1, Dout]) pairs, to be reused
    across calls (keeps per-call wrapper free of conversion ops).
    """
    prepared = []
    for w, b in params:
        dout = w.shape[1]
        prepared.append((jnp.asarray(w).astype(jnp.bfloat16),
                         jnp.asarray(b).astype(jnp.float32).reshape(1, dout)))
    return tuple(prepared)


def _pick_batch_tile(n, *, max_tile=2048):
    """Largest tile <= max_tile that still yields >= 2 grid steps (v7x dual-TC),
    rounded up to the 8-row sublane multiple."""
    half = -(-n // 2)            # cdiv(n, 2)
    half = -(-half // 8) * 8     # round up to a multiple of 8
    return max(8, min(max_tile, half))


def stacked_autoencoder_forward(x, prepared_params, *, batch_tile=None):
    """Forward pass of the stacked auto-encoder.

    x:               [N, D0] array (f32 or bf16; cast to bf16 inside the kernel).
    prepared_params: output of prepare_stacked_autoencoder_params (4 layers).
    Returns [N, D_last] float32.
    """
    n, d0 = x.shape
    d_out = prepared_params[-1][0].shape[1]

    if batch_tile is None:
        batch_tile = _pick_batch_tile(n)
    batch_tile = max(8, -(-batch_tile // 8) * 8)   # keep sublane-aligned
    n_blocks = pl.cdiv(n, batch_tile)              # partial last block handled by Pallas

    flat_args = [x]
    in_specs = [pl.BlockSpec((batch_tile, d0), lambda i: (i, 0))]

    flops = 0
    param_bytes = 0
    for (w, b) in prepared_params:
        din, dout = w.shape
        # Constant index maps -> weights/biases stay VMEM-resident across steps.
        in_specs.append(pl.BlockSpec((din, dout), lambda i: (0, 0)))
        in_specs.append(pl.BlockSpec((1, dout), lambda i: (0, 0)))
        flat_args.append(w)
        flat_args.append(b)
        flops += 2 * n * din * dout
        param_bytes += w.size * w.dtype.itemsize + b.size * b.dtype.itemsize

    out_spec = pl.BlockSpec((batch_tile, d_out), lambda i: (i, 0))

    cost = pl.CostEstimate(
        flops=int(flops),
        transcendentals=0,
        bytes_accessed=int(n * d0 * x.dtype.itemsize + param_bytes + n * d_out * 4),
    )

    return pl.pallas_call(
        _sae_kernel,
        out_shape=jax.ShapeDtypeStruct((n, d_out), jnp.float32),
        grid_spec=pltpu.PrefetchScalarGridSpec(
            num_scalar_prefetch=0,
            grid=(n_blocks,),
            in_specs=in_specs,
            out_specs=out_spec,
        ),
        compiler_params=pltpu.CompilerParams(
            dimension_semantics=("parallel",)),
        cost_estimate=cost,
    )(*flat_args)


def _reference_f32(x, params):
    """Pure f32 semantics of the PyTorch module."""
    h = x
    for (w, b) in params:
        h = jnp.maximum(h @ w + b.reshape(1, -1), 0.0)
    return h


def _reference_bf16(x, params):
    """Mirrors the kernel's bf16-operand / f32-accumulate arithmetic."""
    h = x.astype(jnp.bfloat16)
    z = None
    for (w, b) in params:
        z = jnp.dot(h, w.astype(jnp.bfloat16), preferred_element_type=jnp.float32)
        z = jnp.maximum(z + b.reshape(1, -1).astype(jnp.float32), 0.0)
        h = z.astype(jnp.bfloat16)
    return z


if __name__ == "__main__":
    key = jax.random.PRNGKey(0)

    # 4 stacked encoders 256 -> 128 -> 64 -> 32 -> 16.
    # batch=300 is deliberately not a multiple of the tile (or of 8) to exercise
    # the padding-free ragged-N path (partial final grid block).
    batch = 300
    dims = [256, 128, 64, 32, 16]

    keys = jax.random.split(key, 1 + 2 * 4)
    x = jax.random.normal(keys[0], (batch, dims[0]), dtype=jnp.float32)

    raw_params = []
    for li in range(4):
        din, dout = dims[li], dims[li + 1]
        w = jax.random.normal(keys[1 + 2 * li], (din, dout), jnp.float32) / jnp.sqrt(din)
        b = jax.random.normal(keys[2 + 2 * li], (1, dout), jnp.float32) * 0.01
        raw_params.append((w, b))

    # One-time conversion (bf16 weights / f32 row-biases), reused across calls.
    params = prepare_stacked_autoencoder_params(raw_params)

    out = stacked_autoencoder_forward(x, params)
    out = jax.block_until_ready(out)
    assert out.shape == (batch, dims[-1])
    assert bool(jnp.all(jnp.isfinite(out)))

    # Tight check against a reference using the same bf16-operand arithmetic.
    ref_bf16 = _reference_bf16(x, raw_params)
    assert jnp.allclose(out, ref_bf16, atol=2e-3, rtol=2e-3), "mismatch vs bf16 reference"

    # Sanity check against the exact f32 semantics of the module (bf16 MXU
    # operands introduce a small, bounded relative error).
    ref_f32 = _reference_f32(x, raw_params)
    rel_err = jnp.linalg.norm(out - ref_f32) / jnp.linalg.norm(ref_f32)
    assert rel_err < 5e-2, f"bf16 drift too large: {rel_err}"

    print("KERNEL_OK")
</pallas_src>

<mosaic_0001>
module attributes {stable_mosaic.version = 11 : i64} {
  func.func @_sae_kernel(%arg0: i32, %arg1: memref<152x256xf32, #tpu.memory_space<vmem>>, %arg2: memref<256x128xbf16, #tpu.memory_space<vmem>>, %arg3: memref<1x128xf32, #tpu.memory_space<vmem>>, %arg4: memref<128x64xbf16, #tpu.memory_space<vmem>>, %arg5: memref<1x64xf32, #tpu.memory_space<vmem>>, %arg6: memref<64x32xbf16, #tpu.memory_space<vmem>>, %arg7: memref<1x32xf32, #tpu.memory_space<vmem>>, %arg8: memref<32x16xbf16, #tpu.memory_space<vmem>>, %arg9: memref<1x16xf32, #tpu.memory_space<vmem>>, %arg10: memref<152x16xf32, #tpu.memory_space<vmem>>) attributes {dimension_semantics = [#tpu.dimension_semantics<parallel>], iteration_bounds = array<i64: 2>, scalar_prefetch = 0 : i64, scratch_operands = 0 : i64, tpu.core_type = #tpu.core_type<tc>, window_params = [{transform_indices = @transform_0, window_bounds = array<i64: 152, 256>}, {pipeline_mode = #tpu.pipeline_mode<synchronous>, transform_indices = @transform_1, window_bounds = array<i64: 256, 128>}, {pipeline_mode = #tpu.pipeline_mode<synchronous>, transform_indices = @transform_2, window_bounds = array<i64: 1, 128>}, {pipeline_mode = #tpu.pipeline_mode<synchronous>, transform_indices = @transform_3, window_bounds = array<i64: 128, 64>}, {pipeline_mode = #tpu.pipeline_mode<synchronous>, transform_indices = @transform_4, window_bounds = array<i64: 1, 64>}, {pipeline_mode = #tpu.pipeline_mode<synchronous>, transform_indices = @transform_5, window_bounds = array<i64: 64, 32>}, {pipeline_mode = #tpu.pipeline_mode<synchronous>, transform_indices = @transform_6, window_bounds = array<i64: 1, 32>}, {pipeline_mode = #tpu.pipeline_mode<synchronous>, transform_indices = @transform_7, window_bounds = array<i64: 32, 16>}, {pipeline_mode = #tpu.pipeline_mode<synchronous>, transform_indices = @transform_8, window_bounds = array<i64: 1, 16>}, {transform_indices = @transform_9, window_bounds = array<i64: 152, 16>}]} {
    %c0 = arith.constant 0 : index
    %c0_0 = arith.constant 0 : index
    %0 = vector.load %arg1[%c0, %c0_0] : memref<152x256xf32, #tpu.memory_space<vmem>>, vector<152x256xf32>
    %1 = arith.truncf %0 : vector<152x256xf32> to vector<152x256xbf16>
    %c0_1 = arith.constant 0 : index
    %c0_2 = arith.constant 0 : index
    %2 = vector.load %arg2[%c0_1, %c0_2] : memref<256x128xbf16, #tpu.memory_space<vmem>>, vector<256x128xbf16>
    %cst = arith.constant dense<0.000000e+00> : vector<152x128xf32>
    %3 = tpu.matmul %1, %2, %cst {dimension_numbers = #tpu.dot_dimension_numbers<[1], [0], [0], [1], [0, 0, 1, 1], [], []>} : vector<152x256xbf16>, vector<256x128xbf16>, vector<152x128xf32> -> vector<152x128xf32>
    %c0_3 = arith.constant 0 : index
    %c0_4 = arith.constant 0 : index
    %4 = vector.load %arg3[%c0_3, %c0_4] : memref<1x128xf32, #tpu.memory_space<vmem>>, vector<1x128xf32>
    %5 = vector.broadcast %4 : vector<1x128xf32> to vector<152x128xf32>
    %6 = arith.addf %3, %5 : vector<152x128xf32>
    %cst_5 = arith.constant 0.000000e+00 : f32
    %7 = vector.broadcast %cst_5 : f32 to vector<152x128xf32>
    %8 = arith.maximumf %6, %7 : vector<152x128xf32>
    %9 = arith.truncf %8 : vector<152x128xf32> to vector<152x128xbf16>
    %c0_6 = arith.constant 0 : index
    %c0_7 = arith.constant 0 : index
    %10 = vector.load %arg4[%c0_6, %c0_7] : memref<128x64xbf16, #tpu.memory_space<vmem>>, vector<128x64xbf16>
    %cst_8 = arith.constant dense<0.000000e+00> : vector<152x64xf32>
    %11 = tpu.matmul %9, %10, %cst_8 {dimension_numbers = #tpu.dot_dimension_numbers<[1], [0], [0], [1], [0, 0, 1, 1], [], []>} : vector<152x128xbf16>, vector<128x64xbf16>, vector<152x64xf32> -> vector<152x64xf32>
    %c0_9 = arith.constant 0 : index
    %c0_10 = arith.constant 0 : index
    %12 = vector.load %arg5[%c0_9, %c0_10] : memref<1x64xf32, #tpu.memory_space<vmem>>, vector<1x64xf32>
    %13 = vector.broadcast %12 : vector<1x64xf32> to vector<152x64xf32>
    %14 = arith.addf %11, %13 : vector<152x64xf32>
    %cst_11 = arith.constant 0.000000e+00 : f32
    %15 = vector.broadcast %cst_11 : f32 to vector<152x64xf32>
    %16 = arith.maximumf %14, %15 : vector<152x64xf32>
    %17 = arith.truncf %16 : vector<152x64xf32> to vector<152x64xbf16>
    %c0_12 = arith.constant 0 : index
    %c0_13 = arith.constant 0 : index
    %18 = vector.load %arg6[%c0_12, %c0_13] : memref<64x32xbf16, #tpu.memory_space<vmem>>, vector<64x32xbf16>
    %cst_14 = arith.constant dense<0.000000e+00> : vector<152x32xf32>
    %19 = tpu.matmul %17, %18, %cst_14 {dimension_numbers = #tpu.dot_dimension_numbers<[1], [0], [0], [1], [0, 0, 1, 1], [], []>} : vector<152x64xbf16>, vector<64x32xbf16>, vector<152x32xf32> -> vector<152x32xf32>
    %c0_15 = arith.constant 0 : index
    %c0_16 = arith.constant 0 : index
    %20 = vector.load %arg7[%c0_15, %c0_16] : memref<1x32xf32, #tpu.memory_space<vmem>>, vector<1x32xf32>
    %21 = vector.broadcast %20 : vector<1x32xf32> to vector<152x32xf32>
    %22 = arith.addf %19, %21 : vector<152x32xf32>
    %cst_17 = arith.constant 0.000000e+00 : f32
    %23 = vector.broadcast %cst_17 : f32 to vector<152x32xf32>
    %24 = arith.maximumf %22, %23 : vector<152x32xf32>
    %25 = arith.truncf %24 : vector<152x32xf32> to vector<152x32xbf16>
    %c0_18 = arith.constant 0 : index
    %c0_19 = arith.constant 0 : index
    %26 = vector.load %arg8[%c0_18, %c0_19] : memref<32x16xbf16, #tpu.memory_space<vmem>>, vector<32x16xbf16>
    %cst_20 = arith.constant dense<0.000000e+00> : vector<152x16xf32>
    %27 = tpu.matmul %25, %26, %cst_20 {dimension_numbers = #tpu.dot_dimension_numbers<[1], [0], [0], [1], [0, 0, 1, 1], [], []>} : vector<152x32xbf16>, vector<32x16xbf16>, vector<152x16xf32> -> vector<152x16xf32>
    %c0_21 = arith.constant 0 : index
    %c0_22 = arith.constant 0 : index
    %28 = vector.load %arg9[%c0_21, %c0_22] : memref<1x16xf32, #tpu.memory_space<vmem>>, vector<1x16xf32>
    %29 = vector.broadcast %28 : vector<1x16xf32> to vector<152x16xf32>
    %30 = arith.addf %27, %29 : vector<152x16xf32>
    %cst_23 = arith.constant 0.000000e+00 : f32
    %31 = vector.broadcast %cst_23 : f32 to vector<152x16xf32>
    %32 = arith.maximumf %30, %31 : vector<152x16xf32>
    %c0_24 = arith.constant 0 : index
    %c0_25 = arith.constant 0 : index
    %33 = vector.load %arg10[%c0_24, %c0_25] : memref<152x16xf32, #tpu.memory_space<vmem>>, vector<152x16xf32>
    tpu.vector_store %arg10[%c0_24, %c0_25], %32 {strides = array<i32>} : memref<152x16xf32, #tpu.memory_space<vmem>>, vector<152x16xf32>,
    return
  }
  func.func @transform_0(%arg0: i32) -> (i32, i32) {
    %c0_i32 = arith.constant 0 : i32
    %c0_i32_0 = arith.constant 0 : i32
    return %arg0, %c0_i32 : i32, i32
  }
  func.func @transform_1(%arg0: i32) -> (i32, i32) {
    %c0_i32 = arith.constant 0 : i32
    %c0_i32_0 = arith.constant 0 : i32
    %c0_i32_1 = arith.constant 0 : i32
    return %c0_i32, %c0_i32_0 : i32, i32
  }
  func.func @transform_2(%arg0: i32) -> (i32, i32) {
    %c0_i32 = arith.constant 0 : i32
    %c0_i32_0 = arith.constant 0 : i32
    %c0_i32_1 = arith.constant 0 : i32
    return %c0_i32, %c0_i32_0 : i32, i32
  }
  func.func @transform_3(%arg0: i32) -> (i32, i32) {
    %c0_i32 = arith.constant 0 : i32
    %c0_i32_0 = arith.constant 0 : i32
    %c0_i32_1 = arith.constant 0 : i32
    return %c0_i32, %c0_i32_0 : i32, i32
  }
  func.func @transform_4(%arg0: i32) -> (i32, i32) {
    %c0_i32 = arith.constant 0 : i32
    %c0_i32_0 = arith.constant 0 : i32
    %c0_i32_1 = arith.constant 0 : i32
    return %c0_i32, %c0_i32_0 : i32, i32
  }
  func.func @transform_5(%arg0: i32) -> (i32, i32) {
    %c0_i32 = arith.constant 0 : i32
    %c0_i32_0 = arith.constant 0 : i32
    %c0_i32_1 = arith.constant 0 : i32
    return %c0_i32, %c0_i32_0 : i32, i32
  }
  func.func @transform_6(%arg0: i32) -> (i32, i32) {
    %c0_i32 = arith.constant 0 : i32
    %c0_i32_0 = arith.constant 0 : i32
    %c0_i32_1 = arith.constant 0 : i32
    return %c0_i32, %c0_i32_0 : i32, i32
  }
  func.func @transform_7(%arg0: i32) -> (i32, i32) {
    %c0_i32 = arith.constant 0 : i32
    %c0_i32_0 = arith.constant 0 : i32
    %c0_i32_1 = arith.constant 0 : i32
    return %c0_i32, %c0_i32_0 : i32, i32
  }
  func.func @transform_8(%arg0: i32) -> (i32, i32) {
    %c0_i32 = arith.constant 0 : i32
    %c0_i32_0 = arith.constant 0 : i32
    %c0_i32_1 = arith.constant 0 : i32
    return %c0_i32, %c0_i32_0 : i32, i32
  }
  func.func @transform_9(%arg0: i32) -> (i32, i32) {
    %c0_i32 = arith.constant 0 : i32
    %c0_i32_0 = arith.constant 0 : i32
    return %arg0, %c0_i32 : i32, i32
  }
}

</mosaic_0001>

<bundles_post_ra>
// kernel: tpu_custom_call.1
= control target key start
LH: loop header
LB: loop body
LE: loop exit
PB: predicated region body
PF: predicated region fallthrough
CT: control target
= control target key end

     0   :  { %14 = vsyncpa [#allocation3], 0  ;;  %s2250_s0 = inlined_call_operand.hbm [shape: f32[300,256], index: 0, kind: input, shape index: {}]   ;;  %s2251_s1 = inlined_call_operand.vmem [shape: bf16[256,128], index: 1, kind: input, shape index: {}]   ;;  %s2252_s2 = inlined_call_operand.vmem [shape: f32[1,128], index: 2, kind: input, shape index: {}]   ;;  %s2253_s3 = inlined_call_operand.vmem [shape: bf16[128,64], index: 3, kind: input, shape index: {}]   ;;  %s2254_s4 = inlined_call_operand.vmem [shape: f32[1,64], index: 4, kind: input, shape index: {}]   ;;  %s2255_s5 = inlined_call_operand.vmem [shape: bf16[64,32], index: 5, kind: input, shape index: {}]   ;;  %s2256_s6 = inlined_call_operand.vmem [shape: f32[1,32], index: 6, kind: input, shape index: {}]   ;;  %s2257_s7 = inlined_call_operand.vmem [shape: bf16[32,16], index: 7, kind: input, shape index: {}]   ;;  %s2258_s8 = inlined_call_operand.vmem [shape: f32[1,16], index: 8, kind: input, shape index: {}]   ;;  %s2259_s9 = inlined_call_operand.vmem [shape: f32[300,16], index: 9, kind: output, shape index: {}]  }
   0x1   :  { %16 = vsyncpa [#allocation3 + $0x1], 0  ;;  %s1857_s30 = smov 0   ;;  %s1859_s10 = smov 0  }
   0x2   :  { %s1861_s11 = smov 0   ;;  %s1863_s12 = smov 0  }
   0x3 LB: > { %s1386_s13 = sadd.s32 4294967295, %s1802_s12   ;;  %s1877_s14 = sadd.s32 1, %s1802_s12   ;;  %s1802_s12 = sphi %s1863_s12, %s2266_s12   ;;  %s1798_s11 = sphi %s1861_s11, %s2265_s11   ;;  %s1794_s10 = sphi %s1859_s10, %s2264_s10   ;;  %s1790_s30 = sphi %s1857_s30, %s2263_s30  }
   0x4   : > { %s26_s15 = ssub.s32 %s1802_s12, %s1877_s14  ;;  %s29_s16 = sadd.s32 1, %s1798_s11 }
   0x5   : > { %p27_p0 = scmp.eq.s32.totalorder %s26_s15, 0  ;;  %p36_p1 = scmp.ne.s32.totalorder %s1798_s11, %s1794_s10 }
   0x6   : > { %p37_p2 = scmp.eq.s32.totalorder %s1802_s12, 0  ;;  %p42_p3 = scmp.ne.s32.totalorder %s1794_s10, %s1790_s30 }
   0x7   : > { %s1887_s17 = scalar_select %p27_p0, %s1798_s11, %s29_s16  }
   0x8   : > { %p38_p4 = por %p37_p2, %p36_p1  ;;  %p43_p5 = scmp.eq.s32.totalorder %s1386_s13, 0 }
   0x9   : > { %p1673_p6 = scmp.lt.s32.totalorder %s1802_s12, 2  ;;  %s284_s19 = sand.u32 1, %s1798_s11  }
   0xa   : > { %p1892_p7 = por %p43_p5, %p42_p3  ;;  %s1665_s20 = smul.u32 304, %s284_s19 }
   0xb   : > { %s1452_s21 = smul.u32 4864, %s1802_s12  ;;  %p1898_p8 = pnand %p1673_p6, %p38_p4 }
   0xc   : > { %s288_s26 = scalar_lea.vmem [#allocation2], %s1665_s20  ;;  %s1910_s28 = scalar_lea.sflag [#allocation3], %s284_s19 }
   0xd   : > { %s1905_s25 = scalar_lea.hbm %s2250_s0, %s1452_s21  ;;  %s296_s27 = sshll.u32 %s288_s26, 4  ;;  %s1907_s27 = int_to_ptr.vmem [resolvable:$true] %s296_s27 }
   0xe   : > { %s1738_s29 = scalar_lea.hbm %s1905_s25, 4864  ;;  %p1740_p11 = pneg %p1898_p8 }
   0xf   : > { %p1739_p10 = scmp.ne.s32.totalorder %s1905_s25, %s1738_s29  ;;  %s1743_s16 = scalar_lea.hbm %s2250_s0, 9728 }
  0x10   : > { %p1744_p0 = scmp.lt.u32.totalorder %s1905_s25, %s2250_s0  ;;  %p1745_p1 = scmp.lt.u32.totalorder %s1743_s16, %s1738_s29 }
  0x11   : > { %p1741_p12 = pnand %p1740_p11, %p1739_p10  ;;  %p1747_p3 = scmp.lt.u32.totalorder %s1738_s29, %s1905_s25 }
  0x12   : > { %p1746_p2 = por %p1745_p1, %p1744_p0 }
  0x13   : > { %p1742_p13 = pneg %p1741_p12 }
  0x14   : > { %p1748_p4 = por %p1747_p3, %p1746_p2 }
  0x16   : > { %p1749_p5 = pnand %p1748_p4, %p1742_p13 }
  0x18   : > { %1752 = shalt.err (!%p1749_p5)
}
  0x19   : > { %s1753_s19 = scalar_lea.vmem %s1907_s27, 4864  ;;  %s1804_s23 = smov [#allocation2]  }
  0x1a   : > { %p1754_p6 = scmp.ne.s32.totalorder %s1907_s27, %s1753_s19  ;;  %s1758_s24 = sshll.u32 %s1804_s23, 4  ;;  %s1759_s24 = int_to_ptr.vmem [resolvable:$false] %s1758_s24 }
  0x1b   : > { %s1760_s26 = scalar_lea.vmem %s1759_s24, 9728  ;;  %p1761_p9 = scmp.lt.s32.totalorder %s1907_s27, %s1759_s24 }
  0x1c   : > { %p1756_p10 = pnand %p1754_p6, %p1740_p11  ;;  %p1762_p0 = scmp.lt.s32.totalorder %s1760_s26, %s1753_s19 }
  0x1e   : > { %p1757_p12 = pneg %p1756_p10  ;;  %p1763_p1 = por %p1762_p0, %p1761_p9 }
  0x20   : > { %p1764_p2 = pnand %p1763_p1, %p1757_p12 }
  0x22   : > { %1767 = shalt.err (!%p1764_p2)
}
  0x23   : > { %s1805_s29 = smov 256   ;;  %s1806_s30 = smov 16  }
  0x24   : > { %1672 = dma.hbm_to_vmem [thread:$0]  (!%p1898_p8), %s1905_s25, 4864, %s1907_s27, %s1910_s28, %s1805_s29, %s1805_s29, %s1806_s30  }
  0x25   : > { %p304_p11 = scmp.lt.s32.totalorder %s1802_s12, 3  ;;  %p2262_p13 = scmp.ge.s32.totalorder %s1802_s12, 1 }
  0x27   : > { %p305_p3 = pnand %p2262_p13, %p304_p11 }
  0x28   : > { %s310_s15 = sand.u32 (!%p305_p3), 1, %s1794_s10  }
  0x29   : > { %308 = sbr.rel (%p305_p3) target bundleno = 1039 (0x40f), region = 56  ;;  %s311_s21 = scalar_lea.sflag (!%p305_p3), [#allocation3], %s310_s15 }
  0x2a   : > { %s1666_s16 = smul.u32 (!%p305_p3), 304, %s310_s15 }
  0x2c   : > { %s1942_s20 = scalar_lea.vmem (!%p305_p3), [#allocation2], %s1666_s16 }
  0x30   : > { %1785 = dma.done.wait (%p1892_p7), %s311_s21, 4864  }
  0x31   : > { %1787 = vsyncadd (%p1892_p7), %s311_s21, 4294962432  ;;  %v1708_v0 = vld [vmem:[%s2251_s1 + $0x40] sm:$0xff]   ;;  %v1710_v2 = vld [vmem:[%s2251_s1 + $0x48] sm:$0xff]   ;;  %vm942_vm0 = vcmask 523264   ;;  %vm1137_vm1 = vcmask 261120   ;;  %s350_s18 = smul.u32 19, %s1386_s13 }
  0x32   : > { %v1709_v1 = vld [vmem:[%s2251_s1] sm:$0xff]   ;;  %1453 = vmatprep.subr.bf16.mxu0 %v1708_v0  ;;  %v1711_v3 = vld [vmem:[%s2251_s1 + $0x8] sm:$0xff]   ;;  %v1712_v4 = vld [vmem:[%s2251_s1 + $0x50] sm:$0xff]   ;;  %vm1299_vm2 = vcmask 130048  }
  0x33   : > { %1454 = vmatpush3.bf16.msra.mxu0 %v1709_v1  ;;  %v1713_v5 = vld [vmem:[%s2251_s1 + $0x10] sm:$0xff]   ;;  %v1714_v6 = vld [vmem:[%s2251_s1 + $0x58] sm:$0xff]   ;;  %v1716_v8 = vld [vmem:[%s2251_s1 + $0x60] sm:$0xff]   ;;  %p351_p7 = scmp.lt.s32.totalorder %s350_s18, 37 }
  0x34   : > { %1455 = vmatprep.subr.bf16.mxu0 %v1710_v2  ;;  %v1715_v7 = vld [vmem:[%s2251_s1 + $0x18] sm:$0xff]   ;;  %v1717_v9 = vld [vmem:[%s2251_s1 + $0x20] sm:$0xff]   ;;  %v1718_v10 = vld [vmem:[%s2251_s1 + $0x68] sm:$0xff]  }
  0x35   : > { %v358_v11 = vld [vmem:[%s1942_s20 + $0x8] sm:$0xff]  ;;  %v360_v12 = vld [vmem:[%s1942_s20 + $0x18] sm:$0xff]  ;;  %v1720_v15 = vld [vmem:[%s2251_s1 + $0x70] sm:$0xff]   ;;  %s2268_s18 = smov (!%p351_p7, %s350_s18), 37 }
  0x36   : > { %v396_v13 = vpack.c.bf16 %v360_v12, %v358_v11  ;;  %v1719_v14 = vld [vmem:[%s2251_s1 + $0x28] sm:$0xff]   ;;  %v1721_v16 = vld [vmem:[%s2251_s1 + $0x30] sm:$0xff]   ;;  %v1722_v17 = vld [vmem:[%s2251_s1 + $0x78] sm:$0xff]   ;;  %s1393_s15 = sshll.u32 %s2268_s18, 3 }
  0x37   : > { %1456 = vmatpush3.bf16.msra.mxu0 %v1711_v3  ;;  %v1723_v18 = vld [vmem:[%s2251_s1 + $0x38] sm:$0xff]   ;;  %v357_v19 = vld [vmem:[%s1942_s20] sm:$0xff]  ;;  %v359_v20 = vld [vmem:[%s1942_s20 + $0x10] sm:$0xff]  ;;  %s2179_s19 = scalar_lea.vmem %s2259_s9, %s1393_s15 }
  0x38   : > { %1457 = vmatprep.subr.bf16.mxu0 %v1712_v4  ;;  %582 = vmatprep.mubr.bf16.mxu0 %v396_v13  ;;  %v362_v21 = vld [vmem:[%s1942_s20 + $0x28] sm:$0xff]  ;;  %v364_v22 = vld [vmem:[%s1942_s20 + $0x38] sm:$0xff]  ;;  %v1724_v23 = vld [vmem:[%s2253_s3] sm:$0xff]   ;;  %v395_v24 = vpack.c.bf16 %v359_v20, %v357_v19 }
  0x39   : > { %v1725_v25 = vld [vmem:[%s2253_s3 + $0x8] sm:$0xff]   ;;  %v398_v26 = vpack.c.bf16 %v364_v22, %v362_v21  ;;  %1573 = vmatprep.subr.bf16.mxu1 %v1724_v23  ;;  %v1726_v27 = vld [vmem:[%s2253_s3 + $0x10] sm:$0xff]   ;;  %v1727_v13 = vld [vmem:[%s2253_s3 + $0x18] sm:$0xff]  }
  0x3a   : > { %1574 = vmatpush3.bf16.msra.mxu1 %v1724_v23  ;;  %v361_v28 = vld [vmem:[%s1942_s20 + $0x20] sm:$0xff]  ;;  %v363_v29 = vld [vmem:[%s1942_s20 + $0x30] sm:$0xff]  ;;  %v366_v30 = vld [vmem:[%s1942_s20 + $0x48] sm:$0xff] }
  0x3b   : > { %1458 = vmatpush3.bf16.msra.mxu0 %v1713_v5  ;;  %1575 = vmatprep.subr.bf16.mxu1 %v1725_v25  ;;  %v368_v31 = vld [vmem:[%s1942_s20 + $0x58] sm:$0xff]  ;;  %v397_v32 = vpack.c.bf16 %v363_v29, %v361_v28  ;;  %v365_v34 = vld [vmem:[%s1942_s20 + $0x40] sm:$0xff]  ;;  %v367_v35 = vld [vmem:[%s1942_s20 + $0x50] sm:$0xff] }
  0x3c   : > { %1459 = vmatprep.subr.bf16.mxu0 %v1714_v6  ;;  %v400_v33 = vpack.c.bf16 %v368_v31, %v366_v30  ;;  %v370_v36 = vld [vmem:[%s1942_s20 + $0x68] sm:$0xff]  ;;  %v372_v37 = vld [vmem:[%s1942_s20 + $0x78] sm:$0xff]  ;;  %v399_v38 = vpack.c.bf16 %v367_v35, %v365_v34  ;;  %v369_v40 = vld [vmem:[%s1942_s20 + $0x60] sm:$0xff] }
  0x3d   : > { %v402_v39 = vpack.c.bf16 %v372_v37, %v370_v36  ;;  %v371_v41 = vld [vmem:[%s1942_s20 + $0x70] sm:$0xff]  ;;  %v374_v42 = vld [vmem:[%s1942_s20 + $0x88] sm:$0xff]  ;;  %v376_v43 = vld [vmem:[%s1942_s20 + $0x98] sm:$0xff] }
  0x3e   : > { %1576 = vmatpush3.bf16.msra.mxu1 %v1725_v25  ;;  %v401_v44 = vpack.c.bf16 %v371_v41, %v369_v40  ;;  %v404_v45 = vpack.c.bf16 %v376_v43, %v374_v42  ;;  %v373_v46 = vld [vmem:[%s1942_s20 + $0x80] sm:$0xff]  ;;  %v375_v47 = vld [vmem:[%s1942_s20 + $0x90] sm:$0xff]  ;;  %v378_v48 = vld [vmem:[%s1942_s20 + $0xa8] sm:$0xff] }
  0x3f   : > { %1460 = vmatpush3.bf16.msra.mxu0 %v1715_v7  ;;  %1577 = vmatprep.subr.bf16.mxu1 %v1726_v27  ;;  %v380_v49 = vld [vmem:[%s1942_s20 + $0xb8] sm:$0xff]  ;;  %v403_v50 = vpack.c.bf16 %v375_v47, %v373_v46  ;;  %v377_v52 = vld [vmem:[%s1942_s20 + $0xa0] sm:$0xff]  ;;  %v379_v53 = vld [vmem:[%s1942_s20 + $0xb0] sm:$0xff] }
  0x40   : > { %1461 = vmatprep.subr.bf16.mxu0 %v1716_v8  ;;  %v406_v51 = vpack.c.bf16 %v380_v49, %v378_v48  ;;  %v382_v54 = vld [vmem:[%s1942_s20 + $0xc8] sm:$0xff]  ;;  %v384_v55 = vld [vmem:[%s1942_s20 + $0xd8] sm:$0xff]  ;;  %v405_v56 = vpack.c.bf16 %v379_v53, %v377_v52  ;;  %v381_v58 = vld [vmem:[%s1942_s20 + $0xc0] sm:$0xff] }
  0x41   : > { %v408_v57 = vpack.c.bf16 %v384_v55, %v382_v54  ;;  %v383_v59 = vld [vmem:[%s1942_s20 + $0xd0] sm:$0xff]  ;;  %v386_v60 = vld [vmem:[%s1942_s20 + $0xe8] sm:$0xff]  ;;  %v388_v61 = vld [vmem:[%s1942_s20 + $0xf8] sm:$0xff] }
  0x42   : > { %1578 = vmatpush3.bf16.msra.mxu1 %v1726_v27  ;;  %v407_v62 = vpack.c.bf16 %v383_v59, %v381_v58  ;;  %v410_v63 = vpack.c.bf16 %v388_v61, %v386_v60  ;;  %v385_v0 = vld [vmem:[%s1942_s20 + $0xe0] sm:$0xff]  ;;  %v387_v1 = vld [vmem:[%s1942_s20 + $0xf0] sm:$0xff]  ;;  %v390_v2 = vld [vmem:[%s1942_s20 + $0x108] sm:$0xff] }
  0x43   : > { %1462 = vmatpush3.bf16.msra.mxu0 %v1717_v9  ;;  %v392_v3 = vld [vmem:[%s1942_s20 + $0x118] sm:$0xff]  ;;  %v409_v4 = vpack.c.bf16 %v387_v1, %v385_v0  ;;  %v389_v6 = vld [vmem:[%s1942_s20 + $0x100] sm:$0xff]  ;;  %v391_v7 = vld [vmem:[%s1942_s20 + $0x110] sm:$0xff]  ;;  %1579 = vmatprep.subr.bf16.mxu1 %v1727_v13 }
  0x44   : > { %1463 = vmatprep.subr.bf16.mxu0 %v1718_v10  ;;  %v412_v5 = vpack.c.bf16 %v392_v3, %v390_v2  ;;  %v394_v8 = vld [vmem:[%s1942_s20 + $0x128] sm:$0xff]  ;;  %v411_v9 = vpack.c.bf16 %v391_v7, %v389_v6  ;;  %v393_v11 = vld [vmem:[%s1942_s20 + $0x120] sm:$0xff] }
  0x45   : > { %v414_v10 = vpack.c.bf16 %v394_v8, %v394_v8  ;;  %v413_v12 = vpack.c.bf16 %v393_v11, %v393_v11  ;;  %v2064_v21 = vld [vmem:[%s2252_s2] ss:$0 sm:$0xff]  ;;  %v1733_v46 = vld [vmem:[%s2255_s5 + $0x8] sm:$0xff]  }
  0x46   : > { %1580 = vmatpush3.bf16.msra.mxu1 %v1727_v13 }
  0x47   : > { %1464 = vmatpush3.bf16.msra.mxu0 %v1719_v14  ;;  %v1728_v14 = vld [vmem:[%s2253_s3 + $0x20] sm:$0xff]  }
  0x48   : > { %1465 = vmatprep.subr.bf16.mxu0 %v1720_v15  ;;  %1581 = vmatprep.subr.bf16.mxu1 %v1728_v14  ;;  %v1729_v15 = vld [vmem:[%s2253_s3 + $0x28] sm:$0xff]  }
  0x4a   : > { %1582 = vmatpush3.bf16.msra.mxu1 %v1728_v14 }
  0x4b   : > { %1466 = vmatpush3.bf16.msra.mxu0 %v1721_v16  ;;  %1583 = vmatprep.subr.bf16.mxu1 %v1729_v15  ;;  %v1730_v16 = vld [vmem:[%s2253_s3 + $0x30] sm:$0xff]  }
  0x4c   : > { %1467 = vmatprep.subr.bf16.mxu0 %v1722_v17  ;;  %v1731_v17 = vld [vmem:[%s2253_s3 + $0x38] sm:$0xff]  }
  0x4e   : > { %1584 = vmatpush3.bf16.msra.mxu1 %v1729_v15 }
  0x4f   : > { %1468 = vmatpush3.bf16.msra.mxu0 %v1723_v18  ;;  %1585 = vmatprep.subr.bf16.mxu1 %v1730_v16  ;;  %v1732_v18 = vld [vmem:[%s2255_s5] sm:$0xff]  }
  0x52   : > { %583 = vmatmul.mubr.bf16.vlgmr.msra.gmra.mrb[0].mxu0 %v395_v24  ;;  %1586 = vmatpush3.bf16.msra.mxu1 %v1730_v16 }
  0x53   : > { %590 = vmatprep.mubr.bf16.mxu0 %v398_v26  ;;  %1587 = vmatprep.subr.bf16.mxu1 %v1731_v17 }
  0x56   : > { %1588 = vmatpush3.bf16.msra.mxu1 %v1731_v17 }
  0x57   : > { %1609 = vmatprep.subr.bf16.mxu1 %v1732_v18 }
  0x5a   : > { %591 = vmatmul.mubr.bf16.gmra.mrb[4].mxu0 %v397_v32 }
  0x5b   : > { %598 = vmatprep.mubr.bf16.mxu0 %v400_v33 }
  0x62   : > { %599 = vmatmul.mubr.bf16.gmra.mrb[8].mxu0 %v399_v38 }
  0x63   : > { %606 = vmatprep.mubr.bf16.mxu0 %v402_v39 }
  0x6a   : > { %607 = vmatmul.mubr.bf16.gmra.mrb[12].mxu0 %v401_v44 }
  0x6b   : > { %614 = vmatprep.mubr.bf16.mxu0 %v404_v45 }
  0x72   : > { %615 = vmatmul.mubr.bf16.gmra.mrb[16].mxu0 %v403_v50 }
  0x73   : > { %622 = vmatprep.mubr.bf16.mxu0 %v406_v51 }
  0x7a   : > { %623 = vmatmul.mubr.bf16.gmra.mrb[20].mxu0 %v405_v56 }
  0x7b   : > { %630 = vmatprep.mubr.bf16.mxu0 %v408_v57 }
  0x82   : > { %631 = vmatmul.mubr.bf16.gmra.mrb[24].mxu0 %v407_v62 }
  0x83   : > { %638 = vmatprep.mubr.bf16.mxu0 %v410_v63 }
  0x8a   : > { %639 = vmatmul.mubr.bf16.gmra.mrb[28].mxu0 %v409_v4 }
  0x8b   : > { %646 = vmatprep.mubr.bf16.mxu0 %v412_v5 }
  0x92   : > { %647 = vmatmul.mubr.bf16.gmra.mrb[32].mxu0 %v411_v9 }
  0x93   : > { %654 = vmatprep.mubr.bf16.mxu0 %v414_v10 }
  0x9a   : > { %655 = vmatmul.mubr.bf16.gmra.mrb[36].mxu0 %v413_v12 }
 0x125   : > { %v1469_v19 = vpop.f32.mrb[0].mxu0 }
 0x126   : > { %v1470_v20 = vpop.f32.mrb[1].mxu0 }
 0x127   : > { %v1471_v22 = vadd.f32 %v1470_v20, %v1469_v19  ;;  %v1472_v23 = vpop.f32.mrb[2].mxu0 }
 0x128   : > { %v1473_v24 = vpop.f32.mrb[3].mxu0 }
 0x129   : > { %v1474_v25 = vadd.f32 %v1473_v24, %v1472_v23  ;;  %v585_v26 = vadd.f32 %v1471_v22, %v2064_v21 }
 0x12b   : > { %v588_v27 = vadd.f32 %v1474_v25, %v2064_v21  ;;  %v662_v29 = vmax.f32 %v585_v26, 0.0 }
 0x12d   : > { %v1475_v28 = vpop.f32.mrb[4].mxu0  ;;  %v663_v30 = vmax.f32 %v588_v27, 0.0 }
 0x12e   : > { %v1476_v31 = vpop.f32.mrb[5].mxu0 }
 0x12f   : > { %v1477_v32 = vadd.f32 %v1476_v31, %v1475_v28  ;;  %v1478_v33 = vpop.f32.mrb[6].mxu0  ;;  %v681_v34 = vpack.c.bf16 %v663_v30, %v662_v29 }
 0x130   : > { %v1479_v35 = vpop.f32.mrb[7].mxu0 }
 0x131   : > { %v593_v36 = vadd.f32 %v1477_v32, %v2064_v21  ;;  %v1480_v37 = vadd.f32 %v1479_v35, %v1478_v33  ;;  %1589 = vmatprep.mubr.bf16.mxu1 %v681_v34 }
 0x133   : > { %v596_v38 = vadd.f32 %v1480_v37, %v2064_v21  ;;  %v664_v39 = vmax.f32 %v593_v36, 0.0 }
 0x135   : > { %v665_v40 = vmax.f32 %v596_v38, 0.0  ;;  %v1481_v41 = vpop.f32.mrb[8].mxu0 }
 0x136   : > { %v1482_v42 = vpop.f32.mrb[9].mxu0 }
 0x137   : > { %v1483_v43 = vadd.f32 %v1482_v42, %v1481_v41  ;;  %v1484_v44 = vpop.f32.mrb[10].mxu0  ;;  %v682_v45 = vpack.c.bf16 %v665_v40, %v664_v39 }
 0x138   : > { %v1485_v47 = vpop.f32.mrb[11].mxu0 }
 0x139   : > { %v601_v48 = vadd.f32 %v1483_v43, %v2064_v21  ;;  %v1486_v49 = vadd.f32 %v1485_v47, %v1484_v44  ;;  %1590 = vmatmul.mubr.bf16.vlgmr.msra.gmra.mrb[0].mxu1 %v682_v45 }
 0x13a   : > { %1610 = vmatpush3.bf16.msra.mxu1 %v1732_v18 }
 0x13b   : > { %v604_v50 = vadd.f32 %v1486_v49, %v2064_v21  ;;  %1611 = vmatprep.subr.bf16.mxu1 %v1733_v46  ;;  %v666_v51 = vmax.f32 %v601_v48, 0.0 }
 0x13d   : > { %v667_v52 = vmax.f32 %v604_v50, 0.0  ;;  %v1487_v53 = vpop.f32.mrb[12].mxu0 }
 0x13e   : > { %v1488_v54 = vpop.f32.mrb[13].mxu0  ;;  %1612 = vmatpush3.bf16.msra.mxu1 %v1733_v46 }
 0x13f   : > { %v1489_v55 = vadd.f32 %v1488_v54, %v1487_v53  ;;  %v1490_v56 = vpop.f32.mrb[14].mxu0  ;;  %v683_v57 = vpack.c.bf16 %v667_v52, %v666_v51 }
 0x140   : > { %v1491_v58 = vpop.f32.mrb[15].mxu0 }
 0x141   : > { %v609_v59 = vadd.f32 %v1489_v55, %v2064_v21  ;;  %v1492_v60 = vadd.f32 %v1491_v58, %v1490_v56  ;;  %1593 = vmatprep.mubr.bf16.mxu1 %v683_v57 }
 0x143   : > { %v612_v61 = vadd.f32 %v1492_v60, %v2064_v21  ;;  %v668_v62 = vmax.f32 %v609_v59, 0.0 }
 0x145   : > { %v669_v63 = vmax.f32 %v612_v61, 0.0  ;;  %v1493_v0 = vpop.f32.mrb[16].mxu0 }
 0x146   : > { %v1494_v1 = vpop.f32.mrb[17].mxu0 }
 0x147   : > { %v1495_v2 = vadd.f32 %v1494_v1, %v1493_v0  ;;  %v1496_v3 = vpop.f32.mrb[18].mxu0  ;;  %v684_v4 = vpack.c.bf16 %v669_v63, %v668_v62  ;;  %v1734_v1 = vld [vmem:[%s2255_s5 + $0x10] sm:$0xff]  }
 0x148   : > { %v1497_v5 = vpop.f32.mrb[19].mxu0  ;;  %1613 = vmatprep.subr.bf16.mxu1 %v1734_v1 }
 0x149   : > { %v617_v6 = vadd.f32 %v1495_v2, %v2064_v21  ;;  %v1498_v7 = vadd.f32 %v1497_v5, %v1496_v3  ;;  %1594 = vmatmul.mubr.bf16.gmra.mrb[4].mxu1 %v684_v4  ;;  %v1735_v2 = vld [vmem:[%s2255_s5 + $0x18] sm:$0xff]   ;;  %v2100_v3 = vld [vmem:[%s2254_s4] ss:$0 sm:$0xff] }
 0x14a   : > { %1614 = vmatpush3.bf16.msra.mxu1 %v1734_v1 }
 0x14b   : > { %v620_v8 = vadd.f32 %v1498_v7, %v2064_v21  ;;  %v670_v9 = vmax.f32 %v617_v6, 0.0  ;;  %1615 = vmatprep.subr.bf16.mxu1 %v1735_v2 }
 0x14d   : > { %v671_v10 = vmax.f32 %v620_v8, 0.0  ;;  %v1499_v11 = vpop.f32.mrb[20].mxu0 }
 0x14e   : > { %v1500_v12 = vpop.f32.mrb[21].mxu0  ;;  %1616 = vmatpush3.bf16.msra.mxu1 %v1735_v2 }
 0x14f   : > { %v1501_v13 = vadd.f32 %v1500_v12, %v1499_v11  ;;  %v1502_v14 = vpop.f32.mrb[22].mxu0  ;;  %v685_v15 = vpack.c.bf16 %v671_v10, %v670_v9 }
 0x150   : > { %v1503_v16 = vpop.f32.mrb[23].mxu0 }
 0x151   : > { %v625_v17 = vadd.f32 %v1501_v13, %v2064_v21  ;;  %v1504_v18 = vadd.f32 %v1503_v16, %v1502_v14  ;;  %1597 = vmatprep.mubr.bf16.mxu1 %v685_v15 }
 0x153   : > { %v628_v19 = vadd.f32 %v1504_v18, %v2064_v21  ;;  %v672_v20 = vmax.f32 %v625_v17, 0.0 }
 0x155   : > { %v673_v22 = vmax.f32 %v628_v19, 0.0  ;;  %v1505_v23 = vpop.f32.mrb[24].mxu0 }
 0x156   : > { %v1506_v24 = vpop.f32.mrb[25].mxu0 }
 0x157   : > { %v1507_v25 = vadd.f32 %v1506_v24, %v1505_v23  ;;  %v1508_v26 = vpop.f32.mrb[26].mxu0  ;;  %v686_v27 = vpack.c.bf16 %v673_v22, %v672_v20 }
 0x158   : > { %v1509_v28 = vpop.f32.mrb[27].mxu0 }
 0x159   : > { %v633_v29 = vadd.f32 %v1507_v25, %v2064_v21  ;;  %v1510_v30 = vadd.f32 %v1509_v28, %v1508_v26  ;;  %1598 = vmatmul.mubr.bf16.gmra.mrb[8].mxu1 %v686_v27 }
 0x15b   : > { %v636_v31 = vadd.f32 %v1510_v30, %v2064_v21  ;;  %v674_v32 = vmax.f32 %v633_v29, 0.0 }
 0x15d   : > { %v675_v33 = vmax.f32 %v636_v31, 0.0  ;;  %v1511_v34 = vpop.f32.mrb[28].mxu0 }
 0x15e   : > { %v1512_v35 = vpop.f32.mrb[29].mxu0 }
 0x15f   : > { %v1513_v36 = vadd.f32 %v1512_v35, %v1511_v34  ;;  %v1514_v37 = vpop.f32.mrb[30].mxu0  ;;  %v687_v38 = vpack.c.bf16 %v675_v33, %v674_v32 }
 0x160   : > { %v1515_v39 = vpop.f32.mrb[31].mxu0 }
 0x161   : > { %v641_v40 = vadd.f32 %v1513_v36, %v2064_v21  ;;  %v1516_v41 = vadd.f32 %v1515_v39, %v1514_v37  ;;  %1601 = vmatprep.mubr.bf16.mxu1 %v687_v38 }
 0x163   : > { %v644_v42 = vadd.f32 %v1516_v41, %v2064_v21  ;;  %v676_v43 = vmax.f32 %v641_v40, 0.0 }
 0x165   : > { %v677_v44 = vmax.f32 %v644_v42, 0.0  ;;  %v1517_v45 = vpop.f32.mrb[32].mxu0 }
 0x166   : > { %v1518_v46 = vpop.f32.mrb[33].mxu0 }
 0x167   : > { %v1519_v47 = vadd.f32 %v1518_v46, %v1517_v45  ;;  %v1520_v48 = vpop.f32.mrb[34].mxu0  ;;  %v688_v49 = vpack.c.bf16 %v677_v44, %v676_v43 }
 0x168   : > { %v1521_v50 = vpop.f32.mrb[35].mxu0 }
 0x169   : > { %v649_v51 = vadd.f32 %v1519_v47, %v2064_v21  ;;  %v1522_v52 = vadd.f32 %v1521_v50, %v1520_v48  ;;  %1602 = vmatmul.mubr.bf16.gmra.mrb[12].mxu1 %v688_v49 }
 0x16b   : > { %v652_v53 = vadd.f32 %v1522_v52, %v2064_v21  ;;  %v678_v54 = vmax.f32 %v649_v51, 0.0 }
 0x16d   : > { %v679_v55 = vmax.f32 %v652_v53, 0.0  ;;  %v1523_v56 = vpop.f32.mrb[36].mxu0 }
 0x16e   : > { %v1524_v57 = vpop.f32.mrb[37].mxu0 }
 0x16f   : > { %v1525_v58 = vadd.f32 %v1524_v57, %v1523_v56  ;;  %v1526_v59 = vpop.f32.mrb[38].mxu0  ;;  %v689_v60 = vpack.c.bf16 %v679_v55, %v678_v54 }
 0x170   : > { %v1527_v61 = vpop.f32.mrb[39].mxu0 }
 0x171   : > { %v657_v62 = vadd.f32 %v1525_v58, %v2064_v21  ;;  %1605 = vmatprep.mubr.bf16.mxu1 %v689_v60  ;;  %v1736_v21 = vld [vmem:[%s2257_s7] sm:$0xff]  }
 0x172   : > { %1637 = vmatprep.subr.bf16.mxu0 %v1736_v21  ;;  %1661 = vmatprep.subr.bf16.mxu1 %v1736_v21 }
 0x173   : > { %v680_v63 = vmax.f32 %v657_v62, 0.0  ;;  %1638 = vmatpush3.bf16.msra.mxu0 %v1736_v21 }
 0x175   : > { %v690_v0 = vpack.c.bf16 %v680_v63, %v680_v63 }
 0x177   : > { %1606 = vmatmul.mubr.bf16.gmra.mrb[16].mxu1 %v690_v0 }
 0x20c   : > { %v1591_v4 = vpop.f32.mrb[0].mxu1 }
 0x20d   : > { %v805_v5 = vadd.f32 %v1591_v4, %v2100_v3  ;;  %v796_v6 = vpop.f32.mrb[1].mxu1 }
 0x20e   : > { %v797_v7 = vadd.f32 %v2100_v3, %v796_v6  ;;  %v1592_v8 = vpop.f32.mrb[2].mxu1 }
 0x20f   : > { %v808_v9 = vadd.f32 %v1592_v8, %v2100_v3  ;;  %v799_v10 = vpop.f32.mrb[3].mxu1  ;;  %v876_v12 = vmax.f32 %v805_v5, 0.0 }
 0x210   : > { %v800_v11 = vadd.f32 %v2100_v3, %v799_v10  ;;  %v874_v14 = vmax.f32 %v797_v7, 0.0 }
 0x211   : > { %v877_v13 = vmax.f32 %v808_v9, 0.0  ;;  %v1737_v9 = vld [vmem:[%s2257_s7 + $0x8] sm:$0xff]  }
 0x212   : > { %v875_v15 = vmax.f32 %v800_v11, 0.0  ;;  %1639 = vmatprep.subr.bf16.mxu0 %v1737_v9 }
 0x213   : > { %v894_v16 = vpack.c.bf16 %v877_v13, %v876_v12  ;;  %1640 = vmatpush3.bf16.msra.mxu0 %v1737_v9 }
 0x214   : > { %v893_v17 = vpack.c.bf16 %v875_v15, %v874_v14 }
 0x216   : > { %1617 = vmatprep.mubr.msk.bf16.mxu1 %vm942_vm0, %v893_v17 }
 0x217   : > { %1618 = vmatmul.mubr.msk.bf16.vlgmr.msra.gmra.mrb[20].mxu1 %vm942_vm0, %v894_v16 }
 0x218   : > { %1663 = vmatpush3.bf16.msra.mxu1 %v1736_v21 }
 0x219   : > { %1662 = vmatprep.subr.bf16.mxu1 %v1737_v9 }
 0x21c   : > { %v1595_v18 = vpop.f32.mrb[4].mxu1  ;;  %1664 = vmatpush3.bf16.msra.mxu1 %v1737_v9 }
 0x21d   : > { %v821_v19 = vadd.f32 %v1595_v18, %v2100_v3  ;;  %v812_v20 = vpop.f32.mrb[5].mxu1 }
 0x21e   : > { %v813_v22 = vadd.f32 %v2100_v3, %v812_v20  ;;  %v1596_v23 = vpop.f32.mrb[6].mxu1 }
 0x21f   : > { %v824_v24 = vadd.f32 %v1596_v23, %v2100_v3  ;;  %v815_v25 = vpop.f32.mrb[7].mxu1  ;;  %v880_v27 = vmax.f32 %v821_v19, 0.0 }
 0x220   : > { %v816_v26 = vadd.f32 %v2100_v3, %v815_v25  ;;  %v878_v29 = vmax.f32 %v813_v22, 0.0 }
 0x221   : > { %v881_v28 = vmax.f32 %v824_v24, 0.0 }
 0x222   : > { %v879_v30 = vmax.f32 %v816_v26, 0.0 }
 0x223   : > { %v896_v31 = vpack.c.bf16 %v881_v28, %v880_v27 }
 0x224   : > { %v895_v32 = vpack.c.bf16 %v879_v30, %v878_v29 }
 0x226   : > { %1621 = vmatprep.mubr.msk.bf16.mxu1 %vm942_vm0, %v895_v32 }
 0x227   : > { %1622 = vmatmul.mubr.msk.bf16.gmra.mrb[24].mxu1 %vm942_vm0, %v896_v31 }
 0x22c   : > { %v1599_v33 = vpop.f32.mrb[8].mxu1 }
 0x22d   : > { %v837_v34 = vadd.f32 %v1599_v33, %v2100_v3  ;;  %v828_v35 = vpop.f32.mrb[9].mxu1 }
 0x22e   : > { %v829_v36 = vadd.f32 %v2100_v3, %v828_v35  ;;  %v1600_v37 = vpop.f32.mrb[10].mxu1 }
 0x22f   : > { %v840_v38 = vadd.f32 %v1600_v37, %v2100_v3  ;;  %v831_v39 = vpop.f32.mrb[11].mxu1  ;;  %v884_v41 = vmax.f32 %v837_v34, 0.0 }
 0x230   : > { %v832_v40 = vadd.f32 %v2100_v3, %v831_v39  ;;  %v882_v43 = vmax.f32 %v829_v36, 0.0 }
 0x231   : > { %v885_v42 = vmax.f32 %v840_v38, 0.0 }
 0x232   : > { %v883_v44 = vmax.f32 %v832_v40, 0.0 }
 0x233   : > { %v898_v45 = vpack.c.bf16 %v885_v42, %v884_v41 }
 0x234   : > { %v897_v46 = vpack.c.bf16 %v883_v44, %v882_v43 }
 0x236   : > { %1625 = vmatprep.mubr.msk.bf16.mxu1 %vm942_vm0, %v897_v46 }
 0x237   : > { %1626 = vmatmul.mubr.msk.bf16.gmra.mrb[28].mxu1 %vm942_vm0, %v898_v45 }
 0x23c   : > { %v1603_v47 = vpop.f32.mrb[12].mxu1 }
 0x23d   : > { %v853_v48 = vadd.f32 %v1603_v47, %v2100_v3  ;;  %v844_v49 = vpop.f32.mrb[13].mxu1 }
 0x23e   : > { %v845_v50 = vadd.f32 %v2100_v3, %v844_v49  ;;  %v1604_v51 = vpop.f32.mrb[14].mxu1 }
 0x23f   : > { %v856_v52 = vadd.f32 %v1604_v51, %v2100_v3  ;;  %v847_v53 = vpop.f32.mrb[15].mxu1  ;;  %v888_v55 = vmax.f32 %v853_v48, 0.0 }
 0x240   : > { %v848_v54 = vadd.f32 %v2100_v3, %v847_v53  ;;  %v886_v57 = vmax.f32 %v845_v50, 0.0 }
 0x241   : > { %v889_v56 = vmax.f32 %v856_v52, 0.0 }
 0x242   : > { %v887_v58 = vmax.f32 %v848_v54, 0.0 }
 0x243   : > { %v900_v59 = vpack.c.bf16 %v889_v56, %v888_v55 }
 0x244   : > { %v899_v60 = vpack.c.bf16 %v887_v58, %v886_v57 }
 0x246   : > { %1629 = vmatprep.mubr.msk.bf16.mxu1 %vm942_vm0, %v899_v60 }
 0x247   : > { %1630 = vmatmul.mubr.msk.bf16.gmra.mrb[32].mxu1 %vm942_vm0, %v900_v59 }
 0x24a   : > { %v1607_v61 = vpop.f32.mrb[16].mxu1 }
 0x24b   : > { %v869_v62 = vadd.f32 %v1607_v61, %v2100_v3  ;;  %v860_v63 = vpop.f32.mrb[17].mxu1 }
 0x24c   : > { %v861_v0 = vadd.f32 %v2100_v3, %v860_v63  ;;  %v1608_v1 = vpop.f32.mrb[18].mxu1 }
 0x24d   : > { %v863_v2 = vpop.f32.mrb[19].mxu1  ;;  %v892_v4 = vmax.f32 %v869_v62, 0.0 }
 0x24e   : > { %v864_v21 = vadd.f32 %v2100_v3, %v863_v2  ;;  %v890_v5 = vmax.f32 %v861_v0, 0.0  ;;  %v2137_v3 = vld [vmem:[%s2256_s6] ss:$0 sm:$0xff] }
 0x24f   : > { %v902_v8 = vpack.c.bf16 %v892_v4, %v892_v4 }
 0x250   : > { %v891_v6 = vmax.f32 %v864_v21, 0.0 }
 0x252   : > { %v901_v7 = vpack.c.bf16 %v891_v6, %v890_v5 }
 0x254   : > { %1633 = vmatprep.mubr.msk.bf16.mxu1 %vm942_vm0, %v901_v7 }
 0x255   : > { %1634 = vmatmul.mubr.msk.bf16.gmra.mrb[36].mxu1 %vm942_vm0, %v902_v8 }
 0x2ea   : > { %v1619_v10 = vpop.f32.mrb[20].mxu1 }
 0x2eb   : > { %v1016_v11 = vadd.f32 %v1619_v10, %v2137_v3  ;;  %v1007_v12 = vpop.f32.mrb[21].mxu1 }
 0x2ec   : > { %v1008_v13 = vadd.f32 %v2137_v3, %v1007_v12  ;;  %v1620_v14 = vpop.f32.mrb[22].mxu1 }
 0x2ed   : > { %v1019_v15 = vadd.f32 %v1620_v14, %v2137_v3  ;;  %v1010_v16 = vpop.f32.mrb[23].mxu1  ;;  %v1087_v18 = vmax.f32 %v1016_v11, 0.0 }
 0x2ee   : > { %v1011_v17 = vadd.f32 %v2137_v3, %v1010_v16  ;;  %v1085_v20 = vmax.f32 %v1008_v13, 0.0 }
 0x2ef   : > { %v1088_v19 = vmax.f32 %v1019_v15, 0.0  ;;  %v2173_v15 = vld [vmem:[%s2258_s8] ss:$0 sm:$0xff] }
 0x2f0   : > { %v1086_v22 = vmax.f32 %v1011_v17, 0.0 }
 0x2f1   : > { %v1105_v23 = vpack.c.bf16 %v1088_v19, %v1087_v18 }
 0x2f2   : > { %v1104_v24 = vpack.c.bf16 %v1086_v22, %v1085_v20 }
 0x2f4   : > { %1641 = vmatprep.mubr.msk.bf16.mxu0 %vm1137_vm1, %v1104_v24 }
 0x2f5   : > { %1642 = vmatmul.mubr.msk.bf16.vlgmr.msra.gmra.mrb[40].mxu0 %vm1137_vm1, %v1105_v23 }
 0x2fa   : > { %v1623_v25 = vpop.f32.mrb[24].mxu1 }
 0x2fb   : > { %v1032_v26 = vadd.f32 %v1623_v25, %v2137_v3  ;;  %v1023_v27 = vpop.f32.mrb[25].mxu1 }
 0x2fc   : > { %v1024_v28 = vadd.f32 %v2137_v3, %v1023_v27  ;;  %v1624_v29 = vpop.f32.mrb[26].mxu1 }
 0x2fd   : > { %v1035_v30 = vadd.f32 %v1624_v29, %v2137_v3  ;;  %v1026_v31 = vpop.f32.mrb[27].mxu1  ;;  %v1091_v33 = vmax.f32 %v1032_v26, 0.0 }
 0x2fe   : > { %v1027_v32 = vadd.f32 %v2137_v3, %v1026_v31  ;;  %v1089_v35 = vmax.f32 %v1024_v28, 0.0 }
 0x2ff   : > { %v1092_v34 = vmax.f32 %v1035_v30, 0.0 }
 0x300   : > { %v1090_v36 = vmax.f32 %v1027_v32, 0.0 }
 0x301   : > { %v1107_v37 = vpack.c.bf16 %v1092_v34, %v1091_v33 }
 0x302   : > { %v1106_v38 = vpack.c.bf16 %v1090_v36, %v1089_v35 }
 0x304   : > { %1645 = vmatprep.mubr.msk.bf16.mxu0 %vm1137_vm1, %v1106_v38 }
 0x305   : > { %1646 = vmatmul.mubr.msk.bf16.gmra.mrb[44].mxu0 %vm1137_vm1, %v1107_v37 }
 0x30a   : > { %v1627_v39 = vpop.f32.mrb[28].mxu1 }
 0x30b   : > { %v1048_v40 = vadd.f32 %v1627_v39, %v2137_v3  ;;  %v1039_v41 = vpop.f32.mrb[29].mxu1 }
 0x30c   : > { %v1040_v42 = vadd.f32 %v2137_v3, %v1039_v41  ;;  %v1628_v43 = vpop.f32.mrb[30].mxu1 }
 0x30d   : > { %v1051_v44 = vadd.f32 %v1628_v43, %v2137_v3  ;;  %v1042_v45 = vpop.f32.mrb[31].mxu1  ;;  %v1095_v47 = vmax.f32 %v1048_v40, 0.0 }
 0x30e   : > { %v1043_v46 = vadd.f32 %v2137_v3, %v1042_v45  ;;  %v1093_v49 = vmax.f32 %v1040_v42, 0.0 }
 0x30f   : > { %v1096_v48 = vmax.f32 %v1051_v44, 0.0 }
 0x310   : > { %v1094_v50 = vmax.f32 %v1043_v46, 0.0 }
 0x311   : > { %v1109_v51 = vpack.c.bf16 %v1096_v48, %v1095_v47 }
 0x312   : > { %v1108_v52 = vpack.c.bf16 %v1094_v50, %v1093_v49 }
 0x314   : > { %1649 = vmatprep.mubr.msk.bf16.mxu0 %vm1137_vm1, %v1108_v52 }
 0x315   : > { %1650 = vmatmul.mubr.msk.bf16.gmra.mrb[48].mxu0 %vm1137_vm1, %v1109_v51 }
 0x31a   : > { %v1631_v53 = vpop.f32.mrb[32].mxu1 }
 0x31b   : > { %v1064_v54 = vadd.f32 %v1631_v53, %v2137_v3  ;;  %v1055_v55 = vpop.f32.mrb[33].mxu1 }
 0x31c   : > { %v1056_v56 = vadd.f32 %v2137_v3, %v1055_v55  ;;  %v1632_v57 = vpop.f32.mrb[34].mxu1 }
 0x31d   : > { %v1067_v58 = vadd.f32 %v1632_v57, %v2137_v3  ;;  %v1058_v59 = vpop.f32.mrb[35].mxu1  ;;  %v1099_v61 = vmax.f32 %v1064_v54, 0.0 }
 0x31e   : > { %v1059_v60 = vadd.f32 %v2137_v3, %v1058_v59  ;;  %v1097_v63 = vmax.f32 %v1056_v56, 0.0 }
 0x31f   : > { %v1100_v62 = vmax.f32 %v1067_v58, 0.0 }
 0x320   : > { %v1098_v0 = vmax.f32 %v1059_v60, 0.0 }
 0x321   : > { %v1111_v1 = vpack.c.bf16 %v1100_v62, %v1099_v61 }
 0x322   : > { %v1110_v2 = vpack.c.bf16 %v1098_v0, %v1097_v63 }
 0x324   : > { %1653 = vmatprep.mubr.msk.bf16.mxu1 %vm1137_vm1, %v1110_v2 }
 0x325   : > { %1654 = vmatmul.mubr.msk.bf16.vlgmr.msra.gmra.mrb[40].mxu1 %vm1137_vm1, %v1111_v1 }
 0x328   : > { %v1635_v21 = vpop.f32.mrb[36].mxu1 }
 0x329   : > { %v1080_v4 = vadd.f32 %v1635_v21, %v2137_v3  ;;  %v1071_v5 = vpop.f32.mrb[37].mxu1 }
 0x32a   : > { %v1072_v6 = vadd.f32 %v2137_v3, %v1071_v5  ;;  %v1636_v7 = vpop.f32.mrb[38].mxu1 }
 0x32b   : > { %v1074_v8 = vpop.f32.mrb[39].mxu1  ;;  %v1103_v10 = vmax.f32 %v1080_v4, 0.0 }
 0x32c   : > { %v1075_v9 = vadd.f32 %v2137_v3, %v1074_v8  ;;  %v1101_v11 = vmax.f32 %v1072_v6, 0.0 }
 0x32d   : > { %v1113_v14 = vpack.c.bf16 %v1103_v10, %v1103_v10 }
 0x32e   : > { %v1102_v12 = vmax.f32 %v1075_v9, 0.0 }
 0x330   : > { %v1112_v13 = vpack.c.bf16 %v1102_v12, %v1101_v11 }
 0x332   : > { %1657 = vmatprep.mubr.msk.bf16.mxu1 %vm1137_vm1, %v1112_v13 }
 0x333   : > { %1658 = vmatmul.mubr.msk.bf16.gmra.mrb[44].mxu1 %vm1137_vm1, %v1113_v14 }
 0x3c8   : > { %v1643_v3 = vpop.f32.mrb[40].mxu0 }
 0x3c9   : > { %v1211_v16 = vadd.f32 %v1643_v3, %v2173_v15  ;;  %v1202_v17 = vpop.f32.mrb[41].mxu0 }
 0x3ca   : > { %v1203_v18 = vadd.f32 %v2173_v15, %v1202_v17  ;;  %v1644_v19 = vpop.f32.mrb[42].mxu0 }
 0x3cb   : > { %v1282_v20 = vmax.f32 %v1211_v16, 0.0  ;;  %v1214_v22 = vadd.f32 %v1644_v19, %v2173_v15  ;;  %v1205_v23 = vpop.f32.mrb[43].mxu0 }
 0x3cc   : > { %v1280_v24 = vmax.f32 %v1203_v18, 0.0  ;;  %v1206_v25 = vadd.f32 %v2173_v15, %v1205_v23 }
 0x3cd   : > { %1302 = vst.msk [vmem:[%s2179_s19 + $0x10] sm:$0xff] %vm1299_vm2, %v1282_v20  ;;  %v1283_v26 = vmax.f32 %v1214_v22, 0.0 }
 0x3ce   : > { %1300 = vst.msk [vmem:[%s2179_s19] sm:$0xff] %vm1299_vm2, %v1280_v24  ;;  %v1281_v27 = vmax.f32 %v1206_v25, 0.0 }
 0x3cf   : > { %1303 = vst.msk [vmem:[%s2179_s19 + $0x18] sm:$0xff] %vm1299_vm2, %v1283_v26 }
 0x3d0   : > { %1301 = vst.msk [vmem:[%s2179_s19 + $0x8] sm:$0xff] %vm1299_vm2, %v1281_v27 }
 0x3d8   : > { %v1647_v28 = vpop.f32.mrb[44].mxu0 }
 0x3d9   : > { %v1227_v29 = vadd.f32 %v1647_v28, %v2173_v15  ;;  %v1218_v30 = vpop.f32.mrb[45].mxu0 }
 0x3da   : > { %v1219_v31 = vadd.f32 %v2173_v15, %v1218_v30  ;;  %v1648_v32 = vpop.f32.mrb[46].mxu0 }
 0x3db   : > { %v1286_v33 = vmax.f32 %v1227_v29, 0.0  ;;  %v1230_v34 = vadd.f32 %v1648_v32, %v2173_v15  ;;  %v1221_v35 = vpop.f32.mrb[47].mxu0 }
 0x3dc   : > { %v1284_v36 = vmax.f32 %v1219_v31, 0.0  ;;  %v1222_v37 = vadd.f32 %v2173_v15, %v1221_v35 }
 0x3dd   : > { %1306 = vst.msk [vmem:[%s2179_s19 + $0x30] sm:$0xff] %vm1299_vm2, %v1286_v33  ;;  %v1287_v38 = vmax.f32 %v1230_v34, 0.0 }
 0x3de   : > { %1304 = vst.msk [vmem:[%s2179_s19 + $0x20] sm:$0xff] %vm1299_vm2, %v1284_v36  ;;  %v1285_v39 = vmax.f32 %v1222_v37, 0.0 }
 0x3df   : > { %1307 = vst.msk [vmem:[%s2179_s19 + $0x38] sm:$0xff] %vm1299_vm2, %v1287_v38 }
 0x3e0   : > { %1305 = vst.msk [vmem:[%s2179_s19 + $0x28] sm:$0xff] %vm1299_vm2, %v1285_v39 }
 0x3e8   : > { %v1651_v40 = vpop.f32.mrb[48].mxu0 }
 0x3e9   : > { %v1243_v41 = vadd.f32 %v1651_v40, %v2173_v15  ;;  %v1234_v42 = vpop.f32.mrb[49].mxu0 }
 0x3ea   : > { %v1235_v43 = vadd.f32 %v2173_v15, %v1234_v42  ;;  %v1652_v44 = vpop.f32.mrb[50].mxu0 }
 0x3eb   : > { %v1290_v45 = vmax.f32 %v1243_v41, 0.0  ;;  %v1246_v46 = vadd.f32 %v1652_v44, %v2173_v15  ;;  %v1237_v47 = vpop.f32.mrb[51].mxu0 }
 0x3ec   : > { %v1288_v48 = vmax.f32 %v1235_v43, 0.0  ;;  %v1238_v49 = vadd.f32 %v2173_v15, %v1237_v47 }
 0x3ed   : > { %1310 = vst.msk [vmem:[%s2179_s19 + $0x50] sm:$0xff] %vm1299_vm2, %v1290_v45  ;;  %v1291_v50 = vmax.f32 %v1246_v46, 0.0 }
 0x3ee   : > { %1308 = vst.msk [vmem:[%s2179_s19 + $0x40] sm:$0xff] %vm1299_vm2, %v1288_v48  ;;  %v1289_v51 = vmax.f32 %v1238_v49, 0.0 }
 0x3ef   : > { %1311 = vst.msk [vmem:[%s2179_s19 + $0x58] sm:$0xff] %vm1299_vm2, %v1291_v50 }
 0x3f0   : > { %1309 = vst.msk [vmem:[%s2179_s19 + $0x48] sm:$0xff] %vm1299_vm2, %v1289_v51 }
 0x3f8   : > { %v1655_v52 = vpop.f32.mrb[40].mxu1 }
 0x3f9   : > { %v1259_v53 = vadd.f32 %v1655_v52, %v2173_v15  ;;  %v1250_v54 = vpop.f32.mrb[41].mxu1 }
 0x3fa   : > { %v1251_v55 = vadd.f32 %v2173_v15, %v1250_v54  ;;  %v1656_v56 = vpop.f32.mrb[42].mxu1 }
 0x3fb   : > { %v1294_v57 = vmax.f32 %v1259_v53, 0.0  ;;  %v1262_v58 = vadd.f32 %v1656_v56, %v2173_v15  ;;  %v1253_v59 = vpop.f32.mrb[43].mxu1 }
 0x3fc   : > { %v1292_v60 = vmax.f32 %v1251_v55, 0.0  ;;  %v1254_v61 = vadd.f32 %v2173_v15, %v1253_v59 }
 0x3fd   : > { %1314 = vst.msk [vmem:[%s2179_s19 + $0x70] sm:$0xff] %vm1299_vm2, %v1294_v57  ;;  %v1295_v62 = vmax.f32 %v1262_v58, 0.0 }
 0x3fe   : > { %1312 = vst.msk [vmem:[%s2179_s19 + $0x60] sm:$0xff] %vm1299_vm2, %v1292_v60  ;;  %v1293_v63 = vmax.f32 %v1254_v61, 0.0 }
 0x3ff   : > { %1315 = vst.msk [vmem:[%s2179_s19 + $0x78] sm:$0xff] %vm1299_vm2, %v1295_v62 }
 0x400   : > { %1313 = vst.msk [vmem:[%s2179_s19 + $0x68] sm:$0xff] %vm1299_vm2, %v1293_v63 }
 0x406   : > { %v1659_v0 = vpop.f32.mrb[44].mxu1 }
 0x407   : > { %v1275_v1 = vadd.f32 %v1659_v0, %v2173_v15  ;;  %v1266_v2 = vpop.f32.mrb[45].mxu1 }
 0x408   : > { %v1267_v21 = vadd.f32 %v2173_v15, %v1266_v2  ;;  %v1660_v4 = vpop.f32.mrb[46].mxu1 }
 0x409   : > { %v1298_v5 = vmax.f32 %v1275_v1, 0.0  ;;  %v1269_v6 = vpop.f32.mrb[47].mxu1 }
 0x40a   : > { %v1296_v7 = vmax.f32 %v1267_v21, 0.0  ;;  %v1270_v8 = vadd.f32 %v2173_v15, %v1269_v6 }
 0x40b   : > { %1318 = vst.msk [vmem:[%s2179_s19 + $0x90] sm:$0xff] %vm1299_vm2, %v1298_v5 }
 0x40c   : > { %1316 = vst.msk [vmem:[%s2179_s19 + $0x80] sm:$0xff] %vm1299_vm2, %v1296_v7  ;;  %v1297_v9 = vmax.f32 %v1270_v8, 0.0 }
 0x40e   : > { %1317 = vst.msk [vmem:[%s2179_s19 + $0x88] sm:$0xff] %vm1299_vm2, %v1297_v9 }
 0x40f PF: > { %p19_p8 = scmp.ge.s32.totalorder %s1877_s14, 4   ;;  %s2263_s30 = smov %s1794_s10 }
 0x410   : > { %s2264_s10 = smov %s1798_s11  ;;  %s2265_s11 = smov %s1887_s17 }
 0x411   : > { %s2266_s12 = smov %s1877_s14  ;;  %21 = sbr.rel (!%p19_p8) target bundleno = 3 (0x3), region = 96 }
 0x418   :  { %1341 = vsyncpa [#allocation3], 1 }
 0x419   :  { %1343 = vsyncpa [#allocation3 + $0x1], 1 }

</bundles_post_ra>
